<compile_context>
chip_gen: v6e
topology: v6e:2x2x1
jax: 0.10.0
libtpu: 0.0.40
codegen_flags: <defaults>
</compile_context>

<pallas_src>
import math
import jax
import jax.numpy as jnp
from jax.experimental import pallas as pl
from jax.experimental.pallas import tpu as pltpu

_SQRT_2_OVER_PI = math.sqrt(2.0 / math.pi)


# ---------------------------------------------------------------------------
# Kernel
# ---------------------------------------------------------------------------
def _gmlp_kernel(x_ref, wu_ref, bu_ref, wz_ref, bz_ref, w2_ref, b2_ref,
                 o_ref, acc_ref):
    # x_ref:   (tm, in_f)    native dtype (f32 or bf16)
    # wu_ref:  (in_f, th)    fc1 "u" columns           bu_ref: (1, th)
    # wz_ref:  (in_f, th)    fc1 gate ("z") columns    bz_ref: (1, th)
    # w2_ref:  (th, out_f)                             b2_ref: (1, out_f)
    # o_ref:   (tm, out_f)
    # acc_ref: (tm, out_f) f32 scratch, resident across the hidden-reduction axis
    k = pl.program_id(1)
    nk = pl.num_programs(1)

    x = x_ref[...]
    # fc1 split into two GEMMs; operands stay in their native dtype
    # (MXU-friendly), accumulation in f32 via preferred_element_type.
    u = jnp.dot(x, wu_ref[...], preferred_element_type=jnp.float32) \
        + bu_ref[...].astype(jnp.float32)
    z = jnp.dot(x, wz_ref[...], preferred_element_type=jnp.float32) \
        + bz_ref[...].astype(jnp.float32)

    # tanh-approximate GELU (matches nn.GELU(approximate='tanh')), in f32.
    inner = _SQRT_2_OVER_PI * (z + 0.044715 * (z * z * z))
    gelu_z = 0.5 * z * (1.0 + jnp.tanh(inner))
    gated = (u * gelu_z).astype(w2_ref.dtype)

    # fc2 partial product for this hidden tile (f32).
    partial = jnp.dot(gated, w2_ref[...], preferred_element_type=jnp.float32)

    @pl.when(k == 0)
    def _init():
        acc_ref[...] = jnp.zeros_like(acc_ref)

    # Accumulate on all but the last hidden tile.
    @pl.when(k < nk - 1)
    def _accumulate():
        acc_ref[...] += partial

    # Fused finalize: last k step adds its partial + b2 and writes the output
    # directly (no extra acc store + reload).
    @pl.when(k == nk - 1)
    def _finalize():
        out = acc_ref[...] + partial + b2_ref[...].astype(jnp.float32)
        # dropout with p=0.0 is the identity -> nothing to do
        o_ref[...] = out.astype(o_ref.dtype)


# ---------------------------------------------------------------------------
# Host-side helpers
# ---------------------------------------------------------------------------
def _largest_divisor_leq(n, cap):
    """Largest divisor of n that is <= cap (>= 1)."""
    cap = max(1, min(cap, n))
    for d in range(cap, 0, -1):
        if n % d == 0:
            return d
    return 1


def _round_up(x, m):
    return ((x + m - 1) // m) * m


def _chip_defaults():
    """Per-generation tile / VMEM defaults (see performance review)."""
    try:
        kind = jax.devices()[0].device_kind.lower()
    except Exception:  # pragma: no cover - defensive
        kind = ""
    if "v6" in kind:
        # Worst FLOP:BW ratio -> very tall M tiles to hide weight streaming.
        return dict(tile_m=1024, tile_h=1024,
                    vmem_limit_bytes=96 * 1024 * 1024, multi_tc=False)
    if "v7" in kind or "7x" in kind:
        # Only 64 MiB VMEM per TC, but 2 TCs and high HBM BW: tm=512 is already
        # past the compute/BW knee; keep headroom under the VMEM ceiling.
        return dict(tile_m=512, tile_h=512,
                    vmem_limit_bytes=48 * 1024 * 1024, multi_tc=True)
    if "v5p" in kind:
        return dict(tile_m=512, tile_h=512,
                    vmem_limit_bytes=48 * 1024 * 1024, multi_tc=False)
    if "v5" in kind:  # v5e / v5 lite: scoped default is only 16 MiB -> raise it.
        return dict(tile_m=512, tile_h=1024,
                    vmem_limit_bytes=64 * 1024 * 1024, multi_tc=False)
    # v4 / unknown: conservative.
    return dict(tile_m=512, tile_h=512,
                vmem_limit_bytes=48 * 1024 * 1024, multi_tc=False)


def prepare_gmlp_params(w1, b1, w2, b2):
    """One-time parameter prep: split fc1 into the 'u' and gate ('z') halves
    (column order matches torch's x.chunk(2, dim=-1) on the fc1 output) and
    reshape biases to (1, N). Doing this once avoids an extra W1-sized HBM
    copy per forward call."""
    hidden, out_f = w2.shape
    assert w1.shape[1] == 2 * hidden, "w1 must be (in_features, 2*hidden)"
    wu = jnp.asarray(w1[:, :hidden])
    wz = jnp.asarray(w1[:, hidden:])
    bu = jnp.asarray(b1[:hidden]).reshape(1, hidden)
    bz = jnp.asarray(b1[hidden:]).reshape(1, hidden)
    b2_2d = jnp.asarray(b2).reshape(1, out_f)
    return dict(wu=wu, bu=bu, wz=wz, bz=bz, w2=jnp.asarray(w2), b2=b2_2d)


def gmlp_pallas(x, params, *, tile_m=None, tile_h=None, vmem_limit_bytes=None,
                weight_buffers=None):
    """x: (M, in_f). params from prepare_gmlp_params(). Returns (M, out_f)."""
    wu, bu = params["wu"], params["bu"]
    wz, bz = params["wz"], params["bz"]
    w2, b2 = params["w2"], params["b2"]

    M, in_f = x.shape
    hidden, out_f = w2.shape
    assert wu.shape == (in_f, hidden) and wz.shape == (in_f, hidden)

    cfg = _chip_defaults()
    tile_m = cfg["tile_m"] if tile_m is None else tile_m
    tile_h = cfg["tile_h"] if tile_h is None else tile_h
    vmem_limit_bytes = (cfg["vmem_limit_bytes"] if vmem_limit_bytes is None
                        else vmem_limit_bytes)

    # M tile: big enough to amortize weight streaming, clamped to the problem.
    tm = min(tile_m, M)
    # On 2-TC chips keep at least two M tiles so both TensorCores get work.
    if cfg["multi_tc"] and M >= 256 and tm >= M:
        tm = min(M, max(128, _round_up((M + 1) // 2, 128)))

    # Hidden-reduction tile: largest divisor of hidden <= tile_h (never fall
    # back to the full hidden dim silently -> avoids VMEM blow-up).
    th = _largest_divisor_leq(hidden, tile_h)

    grid_m = pl.cdiv(M, tm)
    grid = (grid_m, hidden // th)

    # TODO(synk): pad out_f / hidden to multiples of 128 lanes for production
    # shapes so the output stores and the u/z boundary are lane-dense.

    # Advisory cost estimate; weights are re-streamed once per M tile.
    weight_bytes = (wu.size * wu.dtype.itemsize
                    + wz.size * wz.dtype.itemsize
                    + w2.size * w2.dtype.itemsize)
    bias_bytes = ((bu.size + bz.size) * bu.dtype.itemsize
                  + b2.size * b2.dtype.itemsize)
    bytes_accessed = int(x.size * x.dtype.itemsize
                         + grid_m * (weight_bytes + bias_bytes)
                         + M * out_f * x.dtype.itemsize)
    flops = 2 * M * (in_f * 2 * hidden + hidden * out_f)
    cost = pl.CostEstimate(flops=flops, transcendentals=M * hidden,
                           bytes_accessed=bytes_accessed)

    def _wspec(shape, idx):
        # Optional deeper buffering for the weight streams (e.g. 3 on v6e if
        # profiling shows exposed weight DMA). Off by default.
        if weight_buffers is not None:
            return pl.BlockSpec(shape, idx,
                                pipeline_mode=pl.Buffered(weight_buffers))
        return pl.BlockSpec(shape, idx)

    return pl.pallas_call(
        _gmlp_kernel,
        out_shape=jax.ShapeDtypeStruct((M, out_f), x.dtype),
        grid_spec=pltpu.PrefetchScalarGridSpec(
            num_scalar_prefetch=0,
            grid=grid,
            in_specs=[
                pl.BlockSpec((tm, in_f), lambda i, k: (i, 0)),      # x tile
                _wspec((in_f, th), lambda i, k: (0, k)),            # Wu tile
                pl.BlockSpec((1, th), lambda i, k: (0, k)),         # bu tile
                _wspec((in_f, th), lambda i, k: (0, k)),            # Wz tile
                pl.BlockSpec((1, th), lambda i, k: (0, k)),         # bz tile
                _wspec((th, out_f), lambda i, k: (k, 0)),           # W2 tile
                pl.BlockSpec((1, out_f), lambda i, k: (0, 0)),      # b2
            ],
            out_specs=pl.BlockSpec((tm, out_f), lambda i, k: (i, 0)),
            scratch_shapes=[pltpu.VMEM((tm, out_f), jnp.float32)],
        ),
        compiler_params=pltpu.CompilerParams(
            dimension_semantics=("parallel", "arbitrary"),
            vmem_limit_bytes=vmem_limit_bytes),
        cost_estimate=cost,
    )(x, wu, bu, wz, bz, w2, b2)


# ---------------------------------------------------------------------------
# Reference & tests
# ---------------------------------------------------------------------------
def _torch_linear_init(key, fan_in, fan_out):
    """Deterministic init mimicking nn.Linear defaults."""
    kw, kb = jax.random.split(key)
    bound = 1.0 / math.sqrt(fan_in)
    w = jax.random.uniform(kw, (fan_in, fan_out), jnp.float32, -bound, bound)
    b = jax.random.uniform(kb, (fan_out,), jnp.float32, -bound, bound)
    return w, b


def gmlp_reference(x, w1, b1, w2, b2):
    h = x @ w1 + b1
    hidden = w2.shape[0]
    u, z = h[..., :hidden], h[..., hidden:]
    inner = _SQRT_2_OVER_PI * (z + 0.044715 * (z ** 3))
    gelu_z = 0.5 * z * (1.0 + jnp.tanh(inner))
    return (u * gelu_z) @ w2 + b2


if __name__ == "__main__":
    key = jax.random.PRNGKey(0)

    # --- Test 1: small shapes consistent with GMlp's forward (B, N, in_features)
    B, N = 2, 8
    in_features, hidden_features = 16, 32
    out_features = in_features

    kx, k1, k2, kx2, k3, k4, kx3 = jax.random.split(key, 7)
    x = jax.random.normal(kx, (B, N, in_features), dtype=jnp.float32)
    w1, b1 = _torch_linear_init(k1, in_features, 2 * hidden_features)
    w2, b2 = _torch_linear_init(k2, hidden_features, out_features)
    params = prepare_gmlp_params(w1, b1, w2, b2)

    x2d = x.reshape(B * N, in_features)
    out2d = gmlp_pallas(x2d, params)
    out = jax.block_until_ready(out2d.reshape(B, N, out_features))

    ref = gmlp_reference(x, w1, b1, w2, b2)
    assert out.shape == (B, N, out_features)
    assert jnp.allclose(out, ref, atol=1e-4, rtol=1e-4), "mismatch vs reference (test 1)"

    # --- Test 2: exercise the M grid (incl. a partial last tile), the
    #     hidden-reduction grid, and the fused finalize, lane-aligned channels.
    M2, in2, hid2, out2 = 160, 128, 256, 128
    xb = jax.random.normal(kx2, (M2, in2), dtype=jnp.float32)
    w1b, b1b = _torch_linear_init(k3, in2, 2 * hid2)
    w2b, b2b = _torch_linear_init(k4, hid2, out2)
    params_b = prepare_gmlp_params(w1b, b1b, w2b, b2b)

    got = gmlp_pallas(xb, params_b, tile_m=64, tile_h=128)
    got = jax.block_until_ready(got)
    ref2 = gmlp_reference(xb, w1b, b1b, w2b, b2b)
    assert jnp.allclose(got, ref2, atol=1e-4, rtol=1e-4), "mismatch vs reference (test 2)"

    # --- Test 3: bf16 operands with f32 accumulation (production path),
    #     chip-default tiles.
    M3 = 256
    xc = jax.random.normal(kx3, (M3, in2), dtype=jnp.float32)
    params_bf16 = prepare_gmlp_params(w1b.astype(jnp.bfloat16), b1b,
                                      w2b.astype(jnp.bfloat16), b2b)
    got_bf16 = gmlp_pallas(xc.astype(jnp.bfloat16), params_bf16)
    got_bf16 = jax.block_until_ready(got_bf16)
    ref3 = gmlp_reference(xc, w1b, b1b, w2b, b2b)
    assert jnp.allclose(got_bf16.astype(jnp.float32), ref3,
                        atol=5e-2, rtol=5e-2), "mismatch vs reference (test 3, bf16)"

    print("KERNEL_OK")
</pallas_src>

<mosaic_0001>
module attributes {stable_mosaic.version = 11 : i64} {
  func.func @_gmlp_kernel(%arg0: i32, %arg1: i32, %arg2: memref<16x16xf32, #tpu.memory_space<vmem>>, %arg3: memref<16x32xf32, #tpu.memory_space<vmem>>, %arg4: memref<1x32xf32, #tpu.memory_space<vmem>>, %arg5: memref<16x32xf32, #tpu.memory_space<vmem>>, %arg6: memref<1x32xf32, #tpu.memory_space<vmem>>, %arg7: memref<32x16xf32, #tpu.memory_space<vmem>>, %arg8: memref<1x16xf32, #tpu.memory_space<vmem>>, %arg9: memref<16x16xf32, #tpu.memory_space<vmem>>, %arg10: memref<16x16xf32, #tpu.memory_space<vmem>>) attributes {dimension_semantics = [#tpu.dimension_semantics<parallel>, #tpu.dimension_semantics<arbitrary>], iteration_bounds = array<i64: 1, 1>, scalar_prefetch = 0 : i64, scratch_operands = 1 : i64, tpu.core_type = #tpu.core_type<tc>, window_params = [{transform_indices = @transform_0, window_bounds = array<i64: 16, 16>}, {transform_indices = @transform_1, window_bounds = array<i64: 16, 32>}, {transform_indices = @transform_2, window_bounds = array<i64: 1, 32>}, {transform_indices = @transform_3, window_bounds = array<i64: 16, 32>}, {transform_indices = @transform_4, window_bounds = array<i64: 1, 32>}, {transform_indices = @transform_5, window_bounds = array<i64: 32, 16>}, {pipeline_mode = #tpu.pipeline_mode<synchronous>, transform_indices = @transform_6, window_bounds = array<i64: 1, 16>}, {transform_indices = @transform_7, window_bounds = array<i64: 16, 16>}]} {
    %c0 = arith.constant 0 : index
    %c0_0 = arith.constant 0 : index
    %0 = vector.load %arg2[%c0, %c0_0] : memref<16x16xf32, #tpu.memory_space<vmem>>, vector<16x16xf32>
    %c0_1 = arith.constant 0 : index
    %c0_2 = arith.constant 0 : index
    %1 = vector.load %arg3[%c0_1, %c0_2] : memref<16x32xf32, #tpu.memory_space<vmem>>, vector<16x32xf32>
    %cst = arith.constant dense<0.000000e+00> : vector<16x32xf32>
    %2 = tpu.matmul %0, %1, %cst {dimension_numbers = #tpu.dot_dimension_numbers<[1], [0], [0], [1], [0, 0, 1, 1], [], []>} : vector<16x16xf32>, vector<16x32xf32>, vector<16x32xf32> -> vector<16x32xf32>
    %c0_3 = arith.constant 0 : index
    %c0_4 = arith.constant 0 : index
    %3 = vector.load %arg4[%c0_3, %c0_4] : memref<1x32xf32, #tpu.memory_space<vmem>>, vector<1x32xf32>
    %4 = vector.broadcast %3 : vector<1x32xf32> to vector<16x32xf32>
    %5 = arith.addf %2, %4 : vector<16x32xf32>
    %c0_5 = arith.constant 0 : index
    %c0_6 = arith.constant 0 : index
    %6 = vector.load %arg5[%c0_5, %c0_6] : memref<16x32xf32, #tpu.memory_space<vmem>>, vector<16x32xf32>
    %cst_7 = arith.constant dense<0.000000e+00> : vector<16x32xf32>
    %7 = tpu.matmul %0, %6, %cst_7 {dimension_numbers = #tpu.dot_dimension_numbers<[1], [0], [0], [1], [0, 0, 1, 1], [], []>} : vector<16x16xf32>, vector<16x32xf32>, vector<16x32xf32> -> vector<16x32xf32>
    %c0_8 = arith.constant 0 : index
    %c0_9 = arith.constant 0 : index
    %8 = vector.load %arg6[%c0_8, %c0_9] : memref<1x32xf32, #tpu.memory_space<vmem>>, vector<1x32xf32>
    %9 = vector.broadcast %8 : vector<1x32xf32> to vector<16x32xf32>
    %10 = arith.addf %7, %9 : vector<16x32xf32>
    %11 = arith.mulf %10, %10 : vector<16x32xf32>
    %12 = arith.mulf %11, %10 : vector<16x32xf32>
    %cst_10 = arith.constant 4.471500e-02 : f32
    %13 = vector.broadcast %cst_10 : f32 to vector<16x32xf32>
    %14 = arith.mulf %13, %12 : vector<16x32xf32>
    %15 = arith.addf %10, %14 : vector<16x32xf32>
    %cst_11 = arith.constant 0.797884583 : f32
    %16 = vector.broadcast %cst_11 : f32 to vector<16x32xf32>
    %17 = arith.mulf %16, %15 : vector<16x32xf32>
    %cst_12 = arith.constant 5.000000e-01 : f32
    %18 = vector.broadcast %cst_12 : f32 to vector<16x32xf32>
    %19 = arith.mulf %18, %10 : vector<16x32xf32>
    %20 = math.tanh %17 : vector<16x32xf32>
    %cst_13 = arith.constant 1.000000e+00 : f32
    %21 = vector.broadcast %cst_13 : f32 to vector<16x32xf32>
    %22 = arith.addf %21, %20 : vector<16x32xf32>
    %23 = arith.mulf %19, %22 : vector<16x32xf32>
    %24 = arith.mulf %5, %23 : vector<16x32xf32>
    %c0_14 = arith.constant 0 : index
    %c0_15 = arith.constant 0 : index
    %25 = vector.load %arg7[%c0_14, %c0_15] : memref<32x16xf32, #tpu.memory_space<vmem>>, vector<32x16xf32>
    %cst_16 = arith.constant dense<0.000000e+00> : vector<16x16xf32>
    %26 = tpu.matmul %24, %25, %cst_16 {dimension_numbers = #tpu.dot_dimension_numbers<[1], [0], [0], [1], [0, 0, 1, 1], [], []>} : vector<16x32xf32>, vector<32x16xf32>, vector<16x16xf32> -> vector<16x16xf32>
    %c0_i32 = arith.constant 0 : i32
    %27 = arith.cmpi eq, %arg1, %c0_i32 : i32
    %28 = arith.extui %27 : i1 to i32
    %c0_i32_17 = arith.constant 0 : i32
    %29 = arith.cmpi ne, %28, %c0_i32_17 : i32
    scf.if %29 {
      %cst_22 = arith.constant 0.000000e+00 : f32
      %36 = vector.broadcast %cst_22 : f32 to vector<16x16xf32>
      %c0_23 = arith.constant 0 : index
      %c0_24 = arith.constant 0 : index
      %37 = vector.load %arg10[%c0_23, %c0_24] : memref<16x16xf32, #tpu.memory_space<vmem>>, vector<16x16xf32>
      tpu.vector_store %arg10[%c0_23, %c0_24], %36 {strides = array<i32>} : memref<16x16xf32, #tpu.memory_space<vmem>>, vector<16x16xf32>,
    } else {
    }
    %c0_i32_18 = arith.constant 0 : i32
    %30 = arith.cmpi slt, %arg1, %c0_i32_18 : i32
    %31 = arith.extui %30 : i1 to i32
    %c0_i32_19 = arith.constant 0 : i32
    %32 = arith.cmpi ne, %31, %c0_i32_19 : i32
    scf.if %32 {
      %c0_22 = arith.constant 0 : index
      %c0_23 = arith.constant 0 : index
      %36 = vector.load %arg10[%c0_22, %c0_23] : memref<16x16xf32, #tpu.memory_space<vmem>>, vector<16x16xf32>
      %37 = arith.addf %36, %26 : vector<16x16xf32>
      %c0_24 = arith.constant 0 : index
      %c0_25 = arith.constant 0 : index
      %38 = vector.load %arg10[%c0_24, %c0_25] : memref<16x16xf32, #tpu.memory_space<vmem>>, vector<16x16xf32>
      tpu.vector_store %arg10[%c0_24, %c0_25], %37 {strides = array<i32>} : memref<16x16xf32, #tpu.memory_space<vmem>>, vector<16x16xf32>,
    } else {
    }
    %c0_i32_20 = arith.constant 0 : i32
    %33 = arith.cmpi eq, %arg1, %c0_i32_20 : i32
    %34 = arith.extui %33 : i1 to i32
    %c0_i32_21 = arith.constant 0 : i32
    %35 = arith.cmpi ne, %34, %c0_i32_21 : i32
    scf.if %35 {
      %c0_22 = arith.constant 0 : index
      %c0_23 = arith.constant 0 : index
      %36 = vector.load %arg10[%c0_22, %c0_23] : memref<16x16xf32, #tpu.memory_space<vmem>>, vector<16x16xf32>
      %37 = arith.addf %36, %26 : vector<16x16xf32>
      %c0_24 = arith.constant 0 : index
      %c0_25 = arith.constant 0 : index
      %38 = vector.load %arg8[%c0_24, %c0_25] : memref<1x16xf32, #tpu.memory_space<vmem>>, vector<1x16xf32>
      %39 = vector.broadcast %38 : vector<1x16xf32> to vector<16x16xf32>
      %40 = arith.addf %37, %39 : vector<16x16xf32>
      %c0_26 = arith.constant 0 : index
      %c0_27 = arith.constant 0 : index
      %41 = vector.load %arg9[%c0_26, %c0_27] : memref<16x16xf32, #tpu.memory_space<vmem>>, vector<16x16xf32>
      tpu.vector_store %arg9[%c0_26, %c0_27], %40 {strides = array<i32>} : memref<16x16xf32, #tpu.memory_space<vmem>>, vector<16x16xf32>,
    } else {
    }
    return
  }
  func.func @transform_0(%arg0: i32, %arg1: i32) -> (i32, i32) {
    %c0_i32 = arith.constant 0 : i32
    %c0_i32_0 = arith.constant 0 : i32
    return %arg0, %c0_i32 : i32, i32
  }
  func.func @transform_1(%arg0: i32, %arg1: i32) -> (i32, i32) {
    %c0_i32 = arith.constant 0 : i32
    %c0_i32_0 = arith.constant 0 : i32
    return %c0_i32, %arg1 : i32, i32
  }
  func.func @transform_2(%arg0: i32, %arg1: i32) -> (i32, i32) {
    %c0_i32 = arith.constant 0 : i32
    %c0_i32_0 = arith.constant 0 : i32
    return %c0_i32, %arg1 : i32, i32
  }
  func.func @transform_3(%arg0: i32, %arg1: i32) -> (i32, i32) {
    %c0_i32 = arith.constant 0 : i32
    %c0_i32_0 = arith.constant 0 : i32
    return %c0_i32, %arg1 : i32, i32
  }
  func.func @transform_4(%arg0: i32, %arg1: i32) -> (i32, i32) {
    %c0_i32 = arith.constant 0 : i32
    %c0_i32_0 = arith.constant 0 : i32
    return %c0_i32, %arg1 : i32, i32
  }
  func.func @transform_5(%arg0: i32, %arg1: i32) -> (i32, i32) {
    %c0_i32 = arith.constant 0 : i32
    %c0_i32_0 = arith.constant 0 : i32
    return %arg1, %c0_i32 : i32, i32
  }
  func.func @transform_6(%arg0: i32, %arg1: i32) -> (i32, i32) {
    %c0_i32 = arith.constant 0 : i32
    %c0_i32_0 = arith.constant 0 : i32
    %c0_i32_1 = arith.constant 0 : i32
    return %c0_i32, %c0_i32_0 : i32, i32
  }
  func.func @transform_7(%arg0: i32, %arg1: i32) -> (i32, i32) {
    %c0_i32 = arith.constant 0 : i32
    %c0_i32_0 = arith.constant 0 : i32
    return %arg0, %c0_i32 : i32, i32
  }
}

</mosaic_0001>

<bundles_post_ra>
// kernel: tpu_custom_call.1
= control target key start
LH: loop header
LB: loop body
LE: loop exit
PB: predicated region body
PF: predicated region fallthrough
CT: control target
= control target key end

     0   :  { %vm38_vm0 = vcmask 130048   ;;  %v438_v3 = vmov 0.0   ;;  %s532_s0 = inlined_call_operand.vmem [shape: f32[16,16], index: 0, kind: input, shape index: {}]   ;;  %s533_s1 = inlined_call_operand.vmem [shape: f32[16,32], index: 1, kind: input, shape index: {}]   ;;  %s534_s2 = inlined_call_operand.vmem [shape: f32[1,32], index: 2, kind: input, shape index: {}]   ;;  %s535_s3 = inlined_call_operand.vmem [shape: f32[16,32], index: 3, kind: input, shape index: {}]   ;;  %s536_s4 = inlined_call_operand.vmem [shape: f32[1,32], index: 4, kind: input, shape index: {}]   ;;  %s537_s5 = inlined_call_operand.vmem [shape: f32[32,16], index: 5, kind: input, shape index: {}]   ;;  %s538_s6 = inlined_call_operand.vmem [shape: f32[1,16], index: 6, kind: input, shape index: {}]   ;;  %s539_s7 = inlined_call_operand.hbm [shape: f32[16,16], index: 7, kind: output, shape index: {}]  }
   0x1   :  { %v30_v0 = vld [vmem:[%s533_s1 + $0x8] sm:$0xff]  ;;  %v29_v1 = vld [vmem:[%s533_s1] sm:$0xff]  ;;  %314 = vst.msk [vmem:[#allocation2] sm:$0xff] %vm38_vm0, %v438_v3  ;;  %315 = vst.msk [vmem:[#allocation2 + $0x8] sm:$0xff] %vm38_vm0, %v438_v3 }
   0x2   :  { %v27_v2 = vld [vmem:[%s532_s0] sm:$0xff]  ;;  %383 = vmatprep.subr.mxu1 %v30_v0  ;;  %v28_v4 = vld [vmem:[%s532_s0 + $0x8] sm:$0xff] }
   0x3   :  { %387 = vmatprep.mubr.msk.f32.mxu1 %vm38_vm0, %v27_v2  ;;  %384 = vmatpush3.msra.mxu1 %v30_v0  ;;  %v121_v5 = vld [vmem:[%s535_s3 + $0x8] sm:$0xff] }
   0x4   :  { %12 = vsyncpa [#allocation4], 0  ;;  %385 = vmatprep.subr.mxu1 %v29_v1  ;;  %v120_v6 = vld [vmem:[%s535_s3] sm:$0xff]  ;;  %v227_v7 = vld [vmem:[%s537_s5 + $0x18] sm:$0xff]  ;;  %vm228_vm1 = vcmask 261120  }
   0x5   :  { %386 = vmatpush3.msra.mxu1 %v29_v1  ;;  %v226_v8 = vld [vmem:[%s537_s5 + $0x10] sm:$0xff]  ;;  %397 = vmatprep.subr.mxu0 %v227_v7  ;;  %v225_v9 = vld [vmem:[%s537_s5 + $0x8] sm:$0xff]  ;;  %v224_v10 = vld [vmem:[%s537_s5] sm:$0xff] }
   0x6   :  { %388 = vmatmul.mubr.msk.f32.vlgmr.msra.gmra.mxu1 %vm38_vm0, %v28_v4  ;;  %390 = vmatprep.subr.mxu1 %v121_v5  ;;  %v363_v13 = vld [vmem:[%s536_s4] ss:$0 sm:$0xff] }
   0x7   :  { %391 = vmatpush3.msra.mxu1 %v121_v5  ;;  %394 = vmatprep.mubr.msk.f32.mxu1 %vm38_vm0, %v27_v2  ;;  %v360_v32 = vld [vmem:[%s534_s2] ss:$0 sm:$0xff]  ;;  %s439_s2 = smov [#allocation3]  }
   0x8   :  { %392 = vmatprep.subr.mxu1 %v120_v6  ;;  %398 = vmatpush3.msra.mxu0 %v227_v7  ;;  %v330_v41 = vld [vmem:[#allocation2 + $0x8] sm:$0xff]  ;;  %v368_v43 = vld [vmem:[%s538_s6] ss:$0 sm:$0xff]  ;;  %s349_s22 = sshll.u32 %s439_s2, 4  ;;  %s350_s22 = int_to_ptr.vmem [resolvable:$true] %s349_s22 }
   0x9   :  { %393 = vmatpush3.msra.mxu1 %v120_v6  ;;  %399 = vmatprep.subr.mxu0 %v226_v8  ;;  %v329_v44 = vld [vmem:[#allocation2] sm:$0xff]  ;;  %s416_s23 = scalar_lea.vmem %s350_s22, 256  ;;  %p421_p1 = scmp.lt.s32.totalorder %s350_s22, %s350_s22 }
   0xa   :  { %395 = vmatmul.mubr.msk.f32.vlgmr.msra.gmra.mxu1 %vm38_vm0, %v28_v4  ;;  %400 = vmatpush3.msra.mxu0 %v226_v8  ;;  %p417_p0 = scmp.ne.s32.totalorder %s350_s22, %s416_s23  ;;  %p422_p2 = scmp.lt.s32.totalorder %s416_s23, %s416_s23 }
   0xb   :  { %401 = vmatprep.subr.mxu0 %v225_v9 }
   0xc   :  { %402 = vmatpush3.msra.mxu0 %v225_v9  ;;  %p423_p3 = por %p422_p2, %p421_p1 }
   0xd   :  { %403 = vmatprep.subr.mxu0 %v224_v10 }
   0xe   :  { %404 = vmatpush3.msra.mxu0 %v224_v10  ;;  %p424_p4 = pnand %p423_p3, %p417_p0 }
  0xc6   :  { %v389_v11 = vpop.f32.mrf.mxu1 }
  0xc7   :  { %v117_v38 = vadd.f32 %v389_v11, %v360_v32 }
  0xc8   :  { %v111_v12 = vpop.f32.mrf.mxu1 }
  0xc9   :  { %v112_v36 = vadd.f32 %v360_v32, %v111_v12 }
  0xca   :  { %v396_v14 = vpop.f32.mrf.mxu1 }
  0xcb   :  { %v201_v15 = vadd.f32 %v396_v14, %v363_v13 }
  0xcc   :  { %v195_v16 = vpop.f32.mrf.mxu1 }
  0xcd   :  { %v205_v17 = vmul.f32 %v201_v15, %v201_v15  ;;  %v196_v18 = vadd.f32 %v363_v13, %v195_v16  ;;  %v215_v31 = vmul.f32 0.5, %v201_v15 }
  0xcf   :  { %v207_v19 = vmul.f32 %v205_v17, %v201_v15  ;;  %v204_v20 = vmul.f32 %v196_v18, %v196_v18  ;;  %v214_v33 = vmul.f32 0.5, %v196_v18 }
  0xd1   :  { %v209_v21 = vmul.f32 0.044715, %v207_v19  ;;  %v206_v22 = vmul.f32 %v204_v20, %v196_v18 }
  0xd3   :  { %v211_v23 = vadd.f32 %v209_v21, %v201_v15  ;;  %v208_v24 = vmul.f32 0.044715, %v206_v22 }
  0xd5   :  { %v213_v25 = vmul.f32 0.7978846, %v211_v23  ;;  %v210_v26 = vadd.f32 %v208_v24, %v196_v18 }
  0xd7   :  { %412 = vtanh.f32 %v213_v25  ;;  %v212_v27 = vmul.f32 0.7978846, %v210_v26 }
  0xd9   :  { %414 = vtanh.f32 %v212_v27 }
  0xe4   :  { %v413_v28 = vpop.eup %412 }
  0xe5   :  { %v219_v29 = vadd.f32 1.0, %v413_v28 }
  0xe6   :  { %v415_v30 = vpop.eup %414 }
  0xe7   :  { %v218_v34 = vadd.f32 1.0, %v415_v30  ;;  %v221_v35 = vmul.f32 %v219_v29, %v215_v31 }
  0xe9   :  { %v220_v37 = vmul.f32 %v218_v34, %v214_v33  ;;  %v223_v40 = vmul.f32 %v221_v35, %v117_v38 }
  0xeb   :  { %v222_v39 = vmul.f32 %v220_v37, %v112_v36 }
  0xed   :  { %405 = vmatprep.mubr.msk.f32.mxu0 %vm228_vm1, %v222_v39 }
  0xee   :  { %406 = vmatmul.mubr.msk.f32.vlgmr.msra.gmra.mxu0 %vm228_vm1, %v223_v40 }
 0x1ae   :  { %v407_v42 = vpop.f32.mrf.mxu0 }
 0x1af   :  { %v332_v45 = vadd.f32 %v407_v42, %v330_v41 }
 0x1b0   :  { %v301_v46 = vpop.f32.mrf.mxu0 }
 0x1b1   :  { %v341_v47 = vadd.f32 %v368_v43, %v332_v45  ;;  %v331_v48 = vadd.f32 %v329_v44, %v301_v46 }
 0x1b3   :  { %343 = vst.msk [vmem:[#allocation3 + $0x8] sm:$0xff] %vm38_vm0, %v341_v47  ;;  %v340_v49 = vadd.f32 %v368_v43, %v331_v48 }
 0x1b5   :  { %342 = vst.msk [vmem:[#allocation3] sm:$0xff] %vm38_vm0, %v340_v49 }
 0x1b6   :  { %427 = shalt.err (!%p424_p4)
}
 0x1b7   :  { %s440_s6 = smov 128   ;;  %s441_s24 = smov 8  }
 0x1b8   :  { %355 = dma.vmem_to_hbm [thread:$0]  %s350_s22, 256, %s539_s7, [#allocation4], %s440_s6, %s440_s6, %s441_s24  }
 0x1b9   :  { %436 = dma.done.wait [#allocation4], 256  }
 0x1ba   :  { %437 = vsyncadd [#allocation4], 4294967040 }
 0x1bb   :  { %359 = vsyncpa [#allocation4], 1 }

</bundles_post_ra>
